<compile_context>
chip_gen: v7x
topology: tpu7x:2x2x1
jax: 0.10.0
libtpu: 0.0.40
codegen_flags: <defaults>
</compile_context>

<pallas_src>
import numpy as np
import jax
import jax.numpy as jnp
from jax.experimental import pallas as pl
from jax.experimental.pallas import tpu as pltpu

# geometry implied by fc1 input dim 8 * 10 * 21
H, W = 10, 21
HP, WP = H + 2, W + 2              # reflection-padded spatial dims
HPWP = HP * WP                     # 276 padded positions per image
IMG_STRIDE = 384                   # per-image lane stride (multiple of 128 -> aligned slices)
C1, C2, C3 = 4, 8, 8               # conv output channels
FC_PAD = 128                       # lane-padded width of the FC head
BN_EPS = 1e-5
# flat-position offsets of the 9 conv taps: (ky-1)*WP + (kx-1), tap index t = ky*3 + kx
TAPS = tuple((ky - 1) * WP + (kx - 1) for ky in range(3) for kx in range(3))


def _full_spec(shape):
    return pl.BlockSpec(shape, lambda *_: (0,) * len(shape))


# ---------------------------------------------------------------------------
# pltpu.roll convention probe (runs once, eagerly).  All shifted reads in the
# main kernel go through one helper, so the sign convention is detected on the
# actual hardware instead of being assumed.
# ---------------------------------------------------------------------------
_ROLL_MATCHES_JNP = None


def _ensure_roll_convention():
    global _ROLL_MATCHES_JNP
    if _ROLL_MATCHES_JNP is None:
        def probe(x_ref, o_ref):
            o_ref[...] = pltpu.roll(x_ref[...], 1, axis=1)

        x = jnp.broadcast_to(jnp.arange(128, dtype=jnp.float32), (8, 128))
        y = pl.pallas_call(
            probe,
            out_shape=jax.ShapeDtypeStruct((8, 128), jnp.float32),
            in_specs=[_full_spec((8, 128))],
            out_specs=_full_spec((8, 128)),
        )(x)
        v = float(jax.device_get(y)[0, 0])
        # jnp.roll convention: out[0] == x[-1] == 127 ; opposite convention: out[0] == 1
        _ROLL_MATCHES_JNP = abs(v - 127.0) < 0.5
    return _ROLL_MATCHES_JNP


# ---------------------------------------------------------------------------
# Fused Pallas kernel (whole forward pass, one block, everything VMEM-resident)
# ---------------------------------------------------------------------------
def _build_kernel(nb, roll_jnp_like):
    S = IMG_STRIDE
    P = nb * S                                    # lane extent of the activations

    def read_shift(v, off):
        # returns r with r[..., p] = v[..., (p + off) mod P]; wrap-around only ever lands on
        # pad-border / dead-lane positions, which are rebuilt or zero-weighted downstream.
        if off == 0:
            return v
        amt = (-off) if roll_jnp_like else off
        return pltpu.roll(v, amt % P, axis=1)

    def kernel(masks_ref, slab1_ref,
               wc1_ref, cb1_ref, cs1_ref, ct1_ref,
               wc2_ref, cb2_ref, cs2_ref, ct2_ref,
               wc3_ref, cb3_ref, cs3_ref, ct3_ref,
               w1_ref, b1_ref, w2_ref, b2_ref, w3_ref, b3_ref,
               o_ref, slab_ref, fcl_ref):
        f32 = jnp.float32

        mx0 = masks_ref[0:1, :] > 0.5             # x == 0        (left pad column)
        mxw = masks_ref[1:2, :] > 0.5             # x == WP-1     (right pad column)
        my0 = masks_ref[2:3, :] > 0.5             # y == 0        (top pad row)
        myh = masks_ref[3:4, :] > 0.5             # y == HP-1     (bottom pad row)

        def epilogue(z, b_ref, s_ref, t_ref):
            # conv bias -> ReLU -> folded eval-mode BatchNorm (per-channel scale/shift)
            return jnp.maximum(z + b_ref[...], 0.0) * s_ref[...] + t_ref[...]

        def repad(y):
            # Rebuild ReflectionPad2d(1) borders from interior values, all on registers:
            # x borders first (from x +/- 2), then y borders (from the x-fixed y +/- 2 rows)
            # so corners resolve to the interior (2,2)-style value.  Only 4 rolls + 4 selects.
            yx = jnp.where(mx0, read_shift(y, 2), y)
            yx = jnp.where(mxw, read_shift(y, -2), yx)
            yy = jnp.where(my0, read_shift(yx, 2 * WP), yx)
            return jnp.where(myh, read_shift(yx, -2 * WP), yy)

        # ---- conv layer 1 (1 -> 4): tap matrix comes pre-built from the wrapper ----------
        a = jnp.dot(wc1_ref[...], slab1_ref[...], preferred_element_type=f32)   # (4, P)
        a = repad(epilogue(a, cb1_ref, cs1_ref, ct1_ref))

        # ---- conv layers 2/3: 9 lane-rolls -> slab scratch -> ONE matmul per layer --------
        def conv(a_in, cin, w_ref, cb_ref, cs_ref, ct_ref):
            for t, off in enumerate(TAPS):
                slab_ref[t * cin:(t + 1) * cin, :] = read_shift(a_in, off)
            z = jnp.dot(w_ref[...], slab_ref[0:9 * cin, :], preferred_element_type=f32)
            return epilogue(z, cb_ref, cs_ref, ct_ref)

        a = repad(conv(a, C1, wc2_ref, cb2_ref, cs2_ref, ct2_ref))              # (8, P)
        y3 = conv(a, C2, wc3_ref, cb3_ref, cs3_ref, ct3_ref)                    # (8, P)
        # y3 borders / dead lanes carry finite garbage; they have zero weight in w1.

        # ---- FC head -----------------------------------------------------------------------
        # Regroup (C, nb*S) -> (nb, C*S) with 32 vreg-aligned lane copies (layout plumbing,
        # ~100 KB of VMEM traffic), then fc1 is a single MXU matmul with K = C3*S.
        # TODO(synk): Dropout(p=0.5) before fc1 is eval-mode identity here.
        for n in range(nb):
            for c in range(C3):
                fcl_ref[n:n + 1, c * S:(c + 1) * S] = y3[c:c + 1, n * S:(n + 1) * S]

        h = jnp.dot(fcl_ref[...], w1_ref[...], preferred_element_type=f32) + b1_ref[...]
        h = jnp.maximum(h, 0.0)                                                 # (nb, 128)
        h = jnp.maximum(
            jnp.dot(h, w2_ref[...], preferred_element_type=f32) + b2_ref[...], 0.0)
        o_ref[...] = jnp.dot(h, w3_ref[...], preferred_element_type=f32) + b3_ref[...]

    return kernel


def _border_masks_np():
    # per-image lane masks (4, IMG_STRIDE); dead lanes [HPWP, IMG_STRIDE) stay 0.
    m = np.zeros((4, IMG_STRIDE), np.float32)
    q = np.arange(HPWP)
    xx, yy = q % WP, q // WP
    m[0, :HPWP] = (xx == 0)
    m[1, :HPWP] = (xx == WP - 1)
    m[2, :HPWP] = (yy == 0)
    m[3, :HPWP] = (yy == HP - 1)
    return m


def _forward_batched(x_nchw, params):
    nb = x_nchw.shape[0]
    S = IMG_STRIDE
    P = nb * S
    kernel = _build_kernel(nb, _ensure_roll_convention())

    # ReflectionPad2d(1) on the tiny raw input, flatten lane-dense with per-image stride S,
    # and build the 9-tap conv1 matrix (9, P) in XLA (tiny; review item #8).
    xp = jnp.pad(x_nchw.astype(jnp.float32), ((0, 0), (0, 0), (1, 1), (1, 1)), mode="reflect")
    flat = jnp.pad(xp.reshape(nb, HPWP), ((0, 0), (0, S - HPWP))).reshape(1, P)
    big = jnp.pad(flat, ((0, 0), (WP + 1, WP + 1)))
    slab1 = jnp.concatenate(
        [big[:, WP + 1 + off: WP + 1 + off + P] for off in TAPS], axis=0)       # (9, P)

    masks = jnp.tile(jnp.asarray(_border_masks_np()), (1, nb))                  # (4, P)

    args = (masks, slab1,
            params["wc1"], params["cb1"], params["cs1"], params["ct1"],
            params["wc2"], params["cb2"], params["cs2"], params["ct2"],
            params["wc3"], params["cb3"], params["cs3"], params["ct3"],
            params["w1"], params["b1"], params["w2"], params["b2"],
            params["w3"], params["b3"])

    return pl.pallas_call(
        kernel,
        out_shape=jax.ShapeDtypeStruct((nb, 2), jnp.float32),
        in_specs=[_full_spec(a.shape) for a in args],
        out_specs=_full_spec((nb, 2)),
        scratch_shapes=[pltpu.VMEM((9 * C2, P), jnp.float32),     # im2col slab (442 KB)
                        pltpu.VMEM((nb, C3 * S), jnp.float32)],   # fc1 LHS     (48 KB)
    )(*args)


def siamese_forward(input1, input2, params):
    b = input1.shape[0]
    x = jnp.concatenate([input1, input2], axis=0)   # batch both branches -> one fused call
    out = _forward_batched(x, params)
    return out[:b], out[b:]


# ---------------------------------------------------------------------------
# Parameter init (deterministic, synthetic) — eval-mode BN folded to scale/shift
# ---------------------------------------------------------------------------
def init_params(key):
    _ensure_roll_convention()                       # eager probe before any jit tracing
    ks = iter(jax.random.split(key, 18))

    def conv_layer(cin, cout):
        w = jax.random.normal(next(ks), (3, 3, cin, cout), jnp.float32) * 0.1
        b = jax.random.normal(next(ks), (cout,), jnp.float32) * 0.05
        gamma = 1.0 + 0.1 * jax.random.normal(next(ks), (cout,), jnp.float32)
        beta = 0.05 * jax.random.normal(next(ks), (cout,), jnp.float32)
        run_mean = jnp.zeros((cout,), jnp.float32)   # fresh-module defaults
        run_var = jnp.ones((cout,), jnp.float32)
        scale = gamma / jnp.sqrt(run_var + BN_EPS)
        shift = beta - run_mean * scale
        # kernel weight layout: (Cout, 9*Cin) with column index = tap*Cin + ci
        wk = jnp.transpose(w.reshape(9, cin, cout), (2, 0, 1)).reshape(cout, 9 * cin)
        return w, b, scale, shift, wk

    w1c, b1c, s1c, t1c, wk1 = conv_layer(1, C1)
    w2c, b2c, s2c, t2c, wk2 = conv_layer(C1, C2)
    w3c, b3c, s3c, t3c, wk3 = conv_layer(C2, C3)

    def linear(din, dout):
        w = jax.random.normal(next(ks), (din, dout), jnp.float32) / jnp.sqrt(float(din))
        b = 0.05 * jax.random.normal(next(ks), (1, dout), jnp.float32)
        return w, b

    w1, b1 = linear(C3 * H * W, 50)     # canonical PyTorch (C,H,W)-flatten row order
    w2, b2 = linear(50, 50)
    w3, b3 = linear(50, 2)

    # Fold the (C,H,W)-flatten into fc1 in the kernel's lane layout: row index
    # c*IMG_STRIDE + (y+1)*WP + (x+1); zero weight on pad border and dead lanes.
    w1k = jnp.pad(w1.reshape(C3, H, W, 50), ((0, 0), (1, 1), (1, 1), (0, 0)))
    w1k = w1k.reshape(C3, HPWP, 50)
    w1k = jnp.pad(w1k, ((0, 0), (0, IMG_STRIDE - HPWP), (0, 0)))
    w1k = w1k.reshape(C3 * IMG_STRIDE, 50)
    # lane-pad the FC head to 128 so the fc weights DMA / compute lane-dense
    w1k = jnp.pad(w1k, ((0, 0), (0, FC_PAD - 50)))
    b1k = jnp.pad(b1, ((0, 0), (0, FC_PAD - 50)))
    w2k = jnp.pad(w2, ((0, FC_PAD - 50), (0, FC_PAD - 50)))
    b2k = jnp.pad(b2, ((0, 0), (0, FC_PAD - 50)))
    w3k = jnp.pad(w3, ((0, FC_PAD - 50), (0, 0)))

    return dict(
        wc1=wk1, cb1=b1c.reshape(C1, 1), cs1=s1c.reshape(C1, 1), ct1=t1c.reshape(C1, 1),
        wc2=wk2, cb2=b2c.reshape(C2, 1), cs2=s2c.reshape(C2, 1), ct2=t2c.reshape(C2, 1),
        wc3=wk3, cb3=b3c.reshape(C3, 1), cs3=s3c.reshape(C3, 1), ct3=t3c.reshape(C3, 1),
        w1=w1k, b1=b1k, w2=w2k, b2=b2k, w3=w3k, b3=b3,
        conv_ref=[(w1c, b1c, s1c, t1c), (w2c, b2c, s2c, t2c), (w3c, b3c, s3c, t3c)],
        fc_ref=(w1, b1, w2, b2, w3, b3),
    )


# ---------------------------------------------------------------------------
# Pure-JAX (XLA) reference of the same eval-mode forward (numerical check)
# ---------------------------------------------------------------------------
def reference_forward(x_nchw, params):
    hi = jax.lax.Precision.HIGHEST
    x = jnp.transpose(x_nchw.astype(jnp.float32), (0, 2, 3, 1))      # NHWC
    for w, b, scale, shift in params["conv_ref"]:
        xp = jnp.pad(x, ((0, 0), (1, 1), (1, 1), (0, 0)), mode="reflect")
        y = jax.lax.conv_general_dilated(
            xp, w, window_strides=(1, 1), padding="VALID",
            dimension_numbers=("NHWC", "HWIO", "NHWC"), precision=hi)
        x = jnp.maximum(y + b, 0.0) * scale + shift
    n = x.shape[0]
    feat = jnp.transpose(x, (0, 3, 1, 2)).reshape(n, -1)             # (C,H,W) flatten order
    w1, b1, w2, b2, w3, b3 = params["fc_ref"]
    h = jnp.maximum(jnp.dot(feat, w1, precision=hi) + b1, 0.0)
    h = jnp.maximum(jnp.dot(h, w2, precision=hi) + b2, 0.0)
    return jnp.dot(h, w3, precision=hi) + b3


# ---------------------------------------------------------------------------
if __name__ == "__main__":
    _ensure_roll_convention()          # tiny eager probe; runs before jit tracing

    key = jax.random.PRNGKey(0)
    k1, k2 = jax.random.split(key)
    B = 2
    x1 = jax.random.normal(k1, (B, 1, H, W), jnp.float32)
    x2 = jax.random.normal(k2, (B, 1, H, W), jnp.float32)

    params = init_params(jax.random.PRNGKey(42))

    fwd = jax.jit(lambda a, b: siamese_forward(a, b, params))
    out1, out2 = fwd(x1, x2)
    jax.block_until_ready((out1, out2))
    assert out1.shape == (B, 2) and out2.shape == (B, 2)

    # numerical sanity check against a plain-JAX implementation of the same forward
    ref = reference_forward(jnp.concatenate([x1, x2], axis=0), params)
    got = jnp.concatenate([out1, out2], axis=0)
    err = float(jnp.max(jnp.abs(got - ref)))
    assert err < 3e-3, f"kernel/reference mismatch: max abs err = {err}"

    print("KERNEL_OK")
</pallas_src>

<mosaic_0001>
module attributes {stable_mosaic.version = 11 : i64} {
  func.func @probe(%arg0: memref<8x128xf32, #tpu.memory_space<vmem>>, %arg1: memref<8x128xf32, #tpu.memory_space<vmem>>) attributes {dimension_semantics = [], scalar_prefetch = 0 : i64, scratch_operands = 0 : i64, tpu.core_type = #tpu.core_type<tc>} {
    %c0 = arith.constant 0 : index
    %c0_0 = arith.constant 0 : index
    %0 = vector.load %arg0[%c0, %c0_0] : memref<8x128xf32, #tpu.memory_space<vmem>>, vector<8x128xf32>
    %c1_i32 = arith.constant 1 : i32
    %1 = tpu.dynamic_rotate %0 by %c1_i32 dim 1 : vector<8x128xf32>, i32 -> vector<8x128xf32>
    %c0_1 = arith.constant 0 : index
    %c0_2 = arith.constant 0 : index
    %2 = vector.load %arg1[%c0_1, %c0_2] : memref<8x128xf32, #tpu.memory_space<vmem>>, vector<8x128xf32>
    tpu.vector_store %arg1[%c0_1, %c0_2], %1 {strides = array<i32>} : memref<8x128xf32, #tpu.memory_space<vmem>>, vector<8x128xf32>,
    return
  }
}

</mosaic_0001>

<bundles_post_ra>
// kernel: tpu_custom_call.1
= control target key start
LH: loop header
LB: loop body
LE: loop exit
PB: predicated region body
PF: predicated region fallthrough
CT: control target
= control target key end

     0   :  { %6 = vsyncpa [#allocation3], 0  ;;  %s128_s0 = inlined_call_operand.hbm [shape: f32[8,128], index: 0, kind: input, shape index: {}]   ;;  %s129_s1 = inlined_call_operand.hbm [shape: f32[8,128], index: 1, kind: output, shape index: {}]  }
   0x1   :  { %7 = vsyncpa [#allocation4], 0  ;;  %s91_s6 = smov [#allocation2]   ;;  %s43_s10 = scalar_lea.hbm %s128_s0, 128 }
   0x2   :  { %s14_s7 = sshll.u32 %s91_s6, 4  ;;  %p44_p0 = scmp.ne.s32.totalorder %s128_s0, %s43_s10  ;;  %s15_s7 = int_to_ptr.vmem [resolvable:$true] %s14_s7 }
   0x3   :  { %p47_p1 = scmp.lt.u32.totalorder %s43_s10, %s128_s0 }
   0x5   :  { %p49_p2 = pnand %p47_p1, %p44_p0 }
   0x7   :  { %52 = shalt.err (!%p49_p2)
}
   0x8   :  { %s53_s15 = scalar_lea.vmem %s15_s7, 128  ;;  %p58_p4 = scmp.lt.s32.totalorder %s15_s7, %s15_s7 }
   0x9   :  { %p54_p3 = scmp.ne.s32.totalorder %s15_s7, %s53_s15  ;;  %p59_p5 = scmp.lt.s32.totalorder %s53_s15, %s53_s15 }
   0xb   :  { %p60_p6 = por %p59_p5, %p58_p4 }
   0xd   :  { %p61_p7 = pnand %p60_p6, %p54_p3 }
   0xf   :  { %64 = shalt.err (!%p61_p7)
}
  0x10   :  { %17 = dma.hbm_to_vmem [thread:$0]  %s128_s0, 128, %s15_s7, [#allocation3]  }
  0x11   :  { %87 = dma.done.wait [#allocation3], 128  }
  0x12   :  { %88 = vsyncadd [#allocation3], 4294967168  ;;  %v21_v0 = vld [vmem:[#allocation2] sm:$0xff]  ;;  %s92_s18 = smov 1   ;;  %s93_s19 = smov [#allocation5]  }
  0x13   :  { %22 = vrot.lane.b32.xlu0 %v21_v0, %s92_s18  ;;  %s31_s20 = sshll.u32 %s93_s19, 4  ;;  %s32_s20 = int_to_ptr.vmem [resolvable:$true] %s31_s20 }
  0x14   :  { %s65_s21 = scalar_lea.vmem %s32_s20, 128  ;;  %p70_p9 = scmp.lt.s32.totalorder %s32_s20, %s32_s20 }
  0x15   :  { %p66_p8 = scmp.ne.s32.totalorder %s32_s20, %s65_s21  ;;  %p71_p10 = scmp.lt.s32.totalorder %s65_s21, %s65_s21 }
  0x17   :  { %p72_p11 = por %p71_p10, %p70_p9 }
  0x19   :  { %p73_p12 = pnand %p72_p11, %p66_p8 }
  0x85   :  { %v23_v1 = vpop.permute.xlu0 %22 }
  0x86   :  { %24 = vst [vmem:[#allocation5] sm:$0xff] %v23_v1 }
  0x87   :  { %76 = shalt.err (!%p73_p12)
}
  0x88   :  { %s77_s0 = scalar_lea.hbm %s129_s1, 128 }
  0x89   :  { %p78_p13 = scmp.ne.s32.totalorder %s129_s1, %s77_s0  ;;  %p81_p0 = scmp.lt.u32.totalorder %s77_s0, %s129_s1 }
  0x8b   :  { %p83_p1 = pnand %p81_p0, %p78_p13 }
  0x8d   :  { %86 = shalt.err (!%p83_p1)
}
  0x8e   :  { %34 = dma.vmem_to_hbm [thread:$0]  %s32_s20, 128, %s129_s1, [#allocation4]  }
  0x8f   :  { %89 = dma.done.wait [#allocation4], 128  }
  0x90   :  { %90 = vsyncadd [#allocation4], 4294967168 }
  0x91   :  { %38 = vsyncpa [#allocation3], 1 }
  0x92   :  { %39 = vsyncpa [#allocation4], 1 }

</bundles_post_ra>
